<compile_context>
chip_gen: v7x
topology: tpu7x:2x2x1
jax: 0.10.0
libtpu: 0.0.40
codegen_flags: <defaults>
</compile_context>

<pallas_src>
import functools

import numpy as np
import jax
import jax.numpy as jnp
from jax import lax
from jax.experimental import pallas as pl
from jax.experimental.pallas import tpu as pltpu


# ---------------------------------------------------------------------------
# Packed head-parameter slab layout (row offsets, all sublane(8)-aligned).
# ---------------------------------------------------------------------------
def _head_layout(hidden_len, num_layers):
    LH = num_layers * hidden_len
    r_w1 = 0                 # Linear(H,64): (LH,128) block, real rows = last H, cols 0:64
    r_w2 = r_w1 + LH         # Linear(64,32): (128,128) block, real = [:64, :32]
    r_w3 = r_w2 + 128        # Linear(32,1):  (128,128) block, real = [:32, :1]
    r_b1 = r_w3 + 128
    r_b2 = r_b1 + 8
    r_b3 = r_b2 + 8
    return r_w1, r_w2, r_w3, r_b1, r_b2, r_b3, r_b3 + 8


# ---------------------------------------------------------------------------
# Pallas kernel: wavefront multi-layer LSTM + 3-layer MLP head, all in VMEM.
# ---------------------------------------------------------------------------
def _mlp_lstm_kernel(x_ref, rec_ref, head_ref, out_ref, *,
                     seq_len, hidden_len, num_layers):
    S, H, L = seq_len, hidden_len, num_layers
    LH = L * H

    # ---- packed recurrent operands (single slab -> one DMA) ---------------
    wih0 = rec_ref[0:H, :]                 # (H, 4LH)  layer-0 input proj, scattered
    w_rec = rec_ref[H:H + LH, :]           # (LH, 4LH) block wavefront recurrent weight
    bias = rec_ref[H + LH:H + LH + 1, :]   # (1, 4LH)  b_ih+b_hh for all layers

    # Batched layer-0 input projection for the whole sequence: one MXU matmul
    # off the serial chain, with every layer's bias folded in.
    x_add = jnp.dot(x_ref[...], wih0,
                    preferred_element_type=jnp.float32) + bias       # (S, 4LH)

    # ---- wavefront LSTM recurrence -----------------------------------------
    # Gate columns are grouped [i | f | g | o]; each group is LH lanes laid out
    # layer0..layerL-1, matching the stacked h/c lane layout, so the gate
    # slices line up directly with the stacked cell state.
    h_stack = jnp.zeros((1, LH), jnp.float32)
    c_stack = jnp.zeros((1, LH), jnp.float32)
    out_rows = []
    for w in range(S + L - 1):             # static unroll: S+L-1 dependent steps
        add_w = x_add[w:w + 1, :] if w < S else bias
        if w == 0:
            gates = add_w                  # h_stack is exactly zero at w == 0
        else:
            # TODO(synk): keep w_rec resident in the MXU staging registers via
            # pltpu.matmul_push_rhs / matmul_acc_lhs / matmul_pop to drop the
            # per-step weight reload from the chain (kept as jnp.dot here for
            # guaranteed lowering / portability).
            gates = jnp.dot(h_stack, w_rec,
                            preferred_element_type=jnp.float32) + add_w   # (1, 4LH)
        s = jax.nn.sigmoid(gates)          # single EUP push for all layers' gates
        i_g = s[:, 0 * LH:1 * LH]
        f_g = s[:, 1 * LH:2 * LH]
        g_g = 2.0 * s[:, 2 * LH:3 * LH] - 1.0    # == tanh(raw g); 2x folded into weights
        o_g = s[:, 3 * LH:4 * LH]
        # TODO(synk): if a bundle dump shows the 64-lane gate-realign rotates
        # serializing on the chain, reorder gate columns / replicate the state
        # across lane groups (medium-confidence small win).
        c_stack = f_g * c_stack + i_g * g_g
        h_stack = o_g * jnp.tanh(c_stack)
        if w < L - 1:
            # Layers that have not reached t=0 yet must keep zero state.
            mask = jnp.concatenate(
                [jnp.ones((1, (w + 1) * H), jnp.float32),
                 jnp.zeros((1, (L - 1 - w) * H), jnp.float32)], axis=1)
            c_stack = c_stack * mask
            h_stack = h_stack * mask
        if w >= L - 1:                     # last layer's h at time t = w-(L-1)
            out_rows.append(h_stack)
    h_all = jnp.concatenate(out_rows, axis=0)      # (S, LH), time ordered

    # ---- MLP head: Linear(H,64)+ReLU -> Linear(64,32)+ReLU -> Linear(32,1) --
    # Head weights live in one zero-padded 128-lane slab; padded lanes stay
    # exactly zero through both ReLUs, and only the last layer's H lanes of
    # h_all carry nonzero weight rows, so no slicing of h_all is needed.
    r_w1, r_w2, r_w3, r_b1, r_b2, r_b3, _ = _head_layout(H, L)
    w1 = head_ref[r_w1:r_w1 + LH, :]
    w2 = head_ref[r_w2:r_w2 + 128, :]
    w3 = head_ref[r_w3:r_w3 + 128, :]
    b1 = head_ref[r_b1:r_b1 + 1, :]
    b2 = head_ref[r_b2:r_b2 + 1, :]
    b3 = head_ref[r_b3:r_b3 + 1, :]
    z1 = jnp.maximum(jnp.dot(h_all, w1, preferred_element_type=jnp.float32) + b1, 0.0)
    z2 = jnp.maximum(jnp.dot(z1, w2, preferred_element_type=jnp.float32) + b2, 0.0)
    z3 = jnp.dot(z2, w3, preferred_element_type=jnp.float32) + b3
    # TODO(synk): at larger S a lane-dense (1, S) output layout would avoid the
    # 1-lane masked store; negligible at S=8 so keep the PyTorch (S, 1) shape.
    out_ref[...] = z3[:, 0:1]


# ---------------------------------------------------------------------------
# Parameter construction (deterministic, PyTorch-shaped, then packed slabs).
# ---------------------------------------------------------------------------
def init_params(key, feature_len, hidden_len, num_layers):
    H, F, L = hidden_len, feature_len, num_layers
    LH = L * H
    assert F <= H, "kernel packs layer-0 features into H lanes"
    assert H % 8 == 0, "packed-slab row offsets must be sublane(8)-aligned"

    bound = 1.0 / float(np.sqrt(H))
    keys = iter(jax.random.split(key, 4 * L + 6))

    def u(shape):
        return jax.random.uniform(next(keys), shape, jnp.float32, -bound, bound)

    # Raw PyTorch-shaped parameters (kept for the independent JAX reference).
    w_ih, w_hh, b_ih, b_hh = [], [], [], []
    for l in range(L):
        in_l = F if l == 0 else H
        w_ih.append(u((4 * H, in_l)))      # torch weight_ih_l{l}, gate order (i,f,g,o)
        w_hh.append(u((4 * H, H)))         # torch weight_hh_l{l}
        b_ih.append(u((4 * H,)))
        b_hh.append(u((4 * H,)))
    w1, b1 = u((64, H)), u((64,))
    w2, b2 = u((32, 64)), u((32,))
    w3, b3 = u((1, 32)), u((1,))

    # ---- pack the wavefront recurrent slab ---------------------------------
    # Columns: 4 gate groups [i|f|g|o]; each group is LH lanes, layer-major.
    wih_big = np.zeros((H, 4 * LH), np.float32)       # layer-0 input proj (rows F..H zero)
    w_big = np.zeros((LH, 4 * LH), np.float32)        # block wavefront recurrent weight
    bias_big = np.zeros((1, 4 * LH), np.float32)

    wih0_t = np.asarray(w_ih[0]).T                    # (F, 4H)
    for g in range(4):
        wih_big[0:F, g * LH:g * LH + H] = wih0_t[:, g * H:(g + 1) * H]
    for l in range(L):
        whh_t = np.asarray(w_hh[l]).T                 # (H, 4H)
        b = np.asarray(b_ih[l] + b_hh[l])             # (4H,)
        for g in range(4):
            cols = slice(g * LH + l * H, g * LH + (l + 1) * H)
            w_big[l * H:(l + 1) * H, cols] = whh_t[:, g * H:(g + 1) * H]
            bias_big[0, cols] = b[g * H:(g + 1) * H]
        if l + 1 < L:                                 # h_l feeds layer l+1's input proj
            wihn_t = np.asarray(w_ih[l + 1]).T        # (H, 4H)
            for g in range(4):
                colsn = slice(g * LH + (l + 1) * H, g * LH + (l + 2) * H)
                w_big[l * H:(l + 1) * H, colsn] = wihn_t[:, g * H:(g + 1) * H]

    # Fold the tanh-gate pre-scale into the parameters (g columns * 2) so the
    # kernel uses a single wide sigmoid and the 2*s-1 recovery only.
    gcols = slice(2 * LH, 3 * LH)
    wih_big[:, gcols] *= 2.0
    w_big[:, gcols] *= 2.0
    bias_big[:, gcols] *= 2.0

    rec_slab = np.zeros((H + LH + 8, 4 * LH), np.float32)
    rec_slab[0:H] = wih_big
    rec_slab[H:H + LH] = w_big
    rec_slab[H + LH] = bias_big[0]

    # ---- pack the head slab (zero-padded to 128 lanes, 8-row aligned) ------
    r_w1, r_w2, r_w3, r_b1, r_b2, r_b3, rows = _head_layout(H, L)
    head_slab = np.zeros((rows, 128), np.float32)
    head_slab[r_w1 + (L - 1) * H:r_w1 + LH, 0:64] = np.asarray(w1).T   # last-layer h only
    head_slab[r_w2:r_w2 + 64, 0:32] = np.asarray(w2).T
    head_slab[r_w3:r_w3 + 32, 0:1] = np.asarray(w3).T
    head_slab[r_b1, 0:64] = np.asarray(b1)
    head_slab[r_b2, 0:32] = np.asarray(b2)
    head_slab[r_b3, 0:1] = np.asarray(b3)

    return dict(hidden_len=H, feature_len=F, num_layers=L,
                w_ih=w_ih, w_hh=w_hh, b_ih=b_ih, b_hh=b_hh,
                w1=w1, b1=b1, w2=w2, b2=b2, w3=w3, b3=b3,
                rec_slab=jnp.asarray(rec_slab),
                head_slab=jnp.asarray(head_slab))


# ---------------------------------------------------------------------------
# Wrapper: transpose like the PyTorch forward, pad features, launch kernel.
# ---------------------------------------------------------------------------
def mlp_forward(x, params):
    B, S, F = x.shape
    assert B == 1, "module's view(len(h_in), -1) + Linear(H,64) requires batch==1"
    H, L = params["hidden_len"], params["num_layers"]

    # input.transpose(0,1) -> (seq, batch, feature); batch==1 squeezed; features
    # zero-padded to H lanes (matching the zero rows of the packed layer-0 weight).
    x_sbf = jnp.transpose(x, (1, 0, 2)).reshape(S, F).astype(jnp.float32)
    x_pad = jnp.pad(x_sbf, ((0, 0), (0, H - F)))

    kernel = functools.partial(_mlp_lstm_kernel, seq_len=S, hidden_len=H, num_layers=L)
    vspec = pl.BlockSpec(memory_space=pltpu.MemorySpace.VMEM)

    # ~280 KB resident total: no grid / tiling (grid steps would only add
    # ~0.35 us each to a latency-bound kernel).  3 input DMAs instead of 10.
    # TODO(synk): for batched serving add a leading batch grid axis with
    # dimension_semantics=("parallel",) so v7x runs sequences on both cores.
    return pl.pallas_call(
        kernel,
        out_shape=jax.ShapeDtypeStruct((S, 1), jnp.float32),
        in_specs=[vspec, vspec, vspec],
        out_specs=vspec,
    )(x_pad, params["rec_slab"], params["head_slab"])


# ---------------------------------------------------------------------------
# Pure-JAX reference (mirrors torch.nn.LSTM + Sequential head), built from the
# RAW PyTorch-shaped weights with the canonical sequential / per-gate
# formulation, so it independently checks the wavefront rewrite, the packed
# slabs, the gate-scale fold and the zero-padded head.
# ---------------------------------------------------------------------------
def reference_forward(x, params):
    B, S, F = x.shape
    H, L = params["hidden_len"], params["num_layers"]
    seq = jnp.transpose(x, (1, 0, 2)).reshape(S, F).astype(jnp.float32)   # (S, F)

    for l in range(L):
        w_ih_t = params["w_ih"][l].T                     # (in, 4H)
        w_hh_t = params["w_hh"][l].T                     # (H, 4H)
        b = (params["b_ih"][l] + params["b_hh"][l]).reshape(1, 4 * H)

        def step(carry, x_t, w_ih_t=w_ih_t, w_hh_t=w_hh_t, b=b):
            h, c = carry
            gates = x_t[None, :] @ w_ih_t + h @ w_hh_t + b
            i_g = jax.nn.sigmoid(gates[:, 0 * H:1 * H])
            f_g = jax.nn.sigmoid(gates[:, 1 * H:2 * H])
            g_g = jnp.tanh(gates[:, 2 * H:3 * H])
            o_g = jax.nn.sigmoid(gates[:, 3 * H:4 * H])
            c = f_g * c + i_g * g_g
            h = o_g * jnp.tanh(c)
            return (h, c), h[0]

        zeros = jnp.zeros((1, H), jnp.float32)
        _, hs = lax.scan(step, (zeros, zeros), seq)
        seq = hs                                         # (S, H)

    z1 = jnp.maximum(seq @ params["w1"].T + params["b1"][None, :], 0.0)
    z2 = jnp.maximum(z1 @ params["w2"].T + params["b2"][None, :], 0.0)
    return z2 @ params["w3"].T + params["b3"][None, :]   # (S, 1)


if __name__ == "__main__":
    feature_len, hidden_len, num_layers = 11, 32, 2
    batch_size, seq_len = 1, 8

    key = jax.random.PRNGKey(0)
    k_param, k_x = jax.random.split(key)
    params = init_params(k_param, feature_len, hidden_len, num_layers)
    x = jax.random.normal(k_x, (batch_size, seq_len, feature_len), jnp.float32)

    out = jax.block_until_ready(mlp_forward(x, params))
    ref = jax.block_until_ready(reference_forward(x, params))

    assert out.shape == (seq_len, 1)
    assert jnp.allclose(out, ref, atol=1e-4, rtol=1e-4), "mismatch vs JAX reference"

    print("KERNEL_OK")
</pallas_src>

<mosaic_0001>
module attributes {stable_mosaic.version = 11 : i64} {
  func.func @_mlp_lstm_kernel(%arg0: memref<8x32xf32, #tpu.memory_space<vmem>>, %arg1: memref<104x256xf32, #tpu.memory_space<vmem>>, %arg2: memref<344x128xf32, #tpu.memory_space<vmem>>, %arg3: memref<8x1xf32, #tpu.memory_space<vmem>>) attributes {dimension_semantics = [], scalar_prefetch = 0 : i64, scratch_operands = 0 : i64, tpu.core_type = #tpu.core_type<tc>} {
    %c0 = arith.constant 0 : index
    %c0_0 = arith.constant 0 : index
    %0 = vector.load %arg1[%c0, %c0_0] : memref<104x256xf32, #tpu.memory_space<vmem>>, vector<32x256xf32>
    %c32 = arith.constant 32 : index
    %c0_1 = arith.constant 0 : index
    %1 = vector.load %arg1[%c32, %c0_1] : memref<104x256xf32, #tpu.memory_space<vmem>>, vector<64x256xf32>
    %c96 = arith.constant 96 : index
    %c0_2 = arith.constant 0 : index
    %2 = vector.load %arg1[%c96, %c0_2] : memref<104x256xf32, #tpu.memory_space<vmem>>, vector<1x256xf32>
    %c0_3 = arith.constant 0 : index
    %c0_4 = arith.constant 0 : index
    %3 = vector.load %arg0[%c0_3, %c0_4] : memref<8x32xf32, #tpu.memory_space<vmem>>, vector<8x32xf32>
    %cst = arith.constant dense<0.000000e+00> : vector<8x256xf32>
    %4 = tpu.matmul %3, %0, %cst {dimension_numbers = #tpu.dot_dimension_numbers<[1], [0], [0], [1], [0, 0, 1, 1], [], []>} : vector<8x32xf32>, vector<32x256xf32>, vector<8x256xf32> -> vector<8x256xf32>
    %5 = vector.broadcast %2 : vector<1x256xf32> to vector<8x256xf32>
    %6 = arith.addf %4, %5 : vector<8x256xf32>
    %cst_5 = arith.constant 0.000000e+00 : f32
    %7 = vector.broadcast %cst_5 : f32 to vector<1x64xf32>
    %8 = vector.extract_strided_slice %6 {offsets = [0, 0], sizes = [1, 256], strides = [1, 1]} : vector<8x256xf32> to vector<1x256xf32>
    %9 = arith.negf %8 : vector<1x256xf32>
    %10 = math.exp %9 : vector<1x256xf32>
    %cst_6 = arith.constant 1.000000e+00 : f32
    %11 = vector.broadcast %cst_6 : f32 to vector<1x256xf32>
    %12 = arith.addf %11, %10 : vector<1x256xf32>
    %13 = arith.divf %11, %12 : vector<1x256xf32>
    %14 = vector.extract_strided_slice %13 {offsets = [0, 0], sizes = [1, 64], strides = [1, 1]} : vector<1x256xf32> to vector<1x64xf32>
    %15 = vector.extract_strided_slice %13 {offsets = [0, 64], sizes = [1, 64], strides = [1, 1]} : vector<1x256xf32> to vector<1x64xf32>
    %16 = vector.extract_strided_slice %13 {offsets = [0, 128], sizes = [1, 64], strides = [1, 1]} : vector<1x256xf32> to vector<1x64xf32>
    %cst_7 = arith.constant 2.000000e+00 : f32
    %17 = vector.broadcast %cst_7 : f32 to vector<1x64xf32>
    %18 = arith.mulf %17, %16 : vector<1x64xf32>
    %cst_8 = arith.constant 1.000000e+00 : f32
    %19 = vector.broadcast %cst_8 : f32 to vector<1x64xf32>
    %20 = arith.subf %18, %19 : vector<1x64xf32>
    %21 = vector.extract_strided_slice %13 {offsets = [0, 192], sizes = [1, 64], strides = [1, 1]} : vector<1x256xf32> to vector<1x64xf32>
    %22 = arith.mulf %15, %7 : vector<1x64xf32>
    %23 = arith.mulf %14, %20 : vector<1x64xf32>
    %24 = arith.addf %22, %23 : vector<1x64xf32>
    %25 = math.tanh %24 : vector<1x64xf32>
    %26 = arith.mulf %21, %25 : vector<1x64xf32>
    %cst_9 = arith.constant 1.000000e+00 : f32
    %27 = vector.broadcast %cst_9 : f32 to vector<1x32xf32>
    %cst_10 = arith.constant 0.000000e+00 : f32
    %28 = vector.broadcast %cst_10 : f32 to vector<1x32xf32>
    %29 = tpu.concatenate %27, %28 in 1 : vector<1x32xf32>, vector<1x32xf32> -> vector<1x64xf32>
    %30 = arith.mulf %24, %29 : vector<1x64xf32>
    %31 = arith.mulf %26, %29 : vector<1x64xf32>
    %32 = vector.extract_strided_slice %6 {offsets = [1, 0], sizes = [1, 256], strides = [1, 1]} : vector<8x256xf32> to vector<1x256xf32>
    %cst_11 = arith.constant dense<0.000000e+00> : vector<1x256xf32>
    %33 = tpu.matmul %31, %1, %cst_11 {dimension_numbers = #tpu.dot_dimension_numbers<[1], [0], [0], [1], [0, 0, 1, 1], [], []>} : vector<1x64xf32>, vector<64x256xf32>, vector<1x256xf32> -> vector<1x256xf32>
    %34 = arith.addf %33, %32 : vector<1x256xf32>
    %35 = arith.negf %34 : vector<1x256xf32>
    %36 = math.exp %35 : vector<1x256xf32>
    %cst_12 = arith.constant 1.000000e+00 : f32
    %37 = vector.broadcast %cst_12 : f32 to vector<1x256xf32>
    %38 = arith.addf %37, %36 : vector<1x256xf32>
    %39 = arith.divf %37, %38 : vector<1x256xf32>
    %40 = vector.extract_strided_slice %39 {offsets = [0, 0], sizes = [1, 64], strides = [1, 1]} : vector<1x256xf32> to vector<1x64xf32>
    %41 = vector.extract_strided_slice %39 {offsets = [0, 64], sizes = [1, 64], strides = [1, 1]} : vector<1x256xf32> to vector<1x64xf32>
    %42 = vector.extract_strided_slice %39 {offsets = [0, 128], sizes = [1, 64], strides = [1, 1]} : vector<1x256xf32> to vector<1x64xf32>
    %cst_13 = arith.constant 2.000000e+00 : f32
    %43 = vector.broadcast %cst_13 : f32 to vector<1x64xf32>
    %44 = arith.mulf %43, %42 : vector<1x64xf32>
    %cst_14 = arith.constant 1.000000e+00 : f32
    %45 = vector.broadcast %cst_14 : f32 to vector<1x64xf32>
    %46 = arith.subf %44, %45 : vector<1x64xf32>
    %47 = vector.extract_strided_slice %39 {offsets = [0, 192], sizes = [1, 64], strides = [1, 1]} : vector<1x256xf32> to vector<1x64xf32>
    %48 = arith.mulf %41, %30 : vector<1x64xf32>
    %49 = arith.mulf %40, %46 : vector<1x64xf32>
    %50 = arith.addf %48, %49 : vector<1x64xf32>
    %51 = math.tanh %50 : vector<1x64xf32>
    %52 = arith.mulf %47, %51 : vector<1x64xf32>
    %53 = vector.extract_strided_slice %6 {offsets = [2, 0], sizes = [1, 256], strides = [1, 1]} : vector<8x256xf32> to vector<1x256xf32>
    %cst_15 = arith.constant dense<0.000000e+00> : vector<1x256xf32>
    %54 = tpu.matmul %52, %1, %cst_15 {dimension_numbers = #tpu.dot_dimension_numbers<[1], [0], [0], [1], [0, 0, 1, 1], [], []>} : vector<1x64xf32>, vector<64x256xf32>, vector<1x256xf32> -> vector<1x256xf32>
    %55 = arith.addf %54, %53 : vector<1x256xf32>
    %56 = arith.negf %55 : vector<1x256xf32>
    %57 = math.exp %56 : vector<1x256xf32>
    %cst_16 = arith.constant 1.000000e+00 : f32
    %58 = vector.broadcast %cst_16 : f32 to vector<1x256xf32>
    %59 = arith.addf %58, %57 : vector<1x256xf32>
    %60 = arith.divf %58, %59 : vector<1x256xf32>
    %61 = vector.extract_strided_slice %60 {offsets = [0, 0], sizes = [1, 64], strides = [1, 1]} : vector<1x256xf32> to vector<1x64xf32>
    %62 = vector.extract_strided_slice %60 {offsets = [0, 64], sizes = [1, 64], strides = [1, 1]} : vector<1x256xf32> to vector<1x64xf32>
    %63 = vector.extract_strided_slice %60 {offsets = [0, 128], sizes = [1, 64], strides = [1, 1]} : vector<1x256xf32> to vector<1x64xf32>
    %cst_17 = arith.constant 2.000000e+00 : f32
    %64 = vector.broadcast %cst_17 : f32 to vector<1x64xf32>
    %65 = arith.mulf %64, %63 : vector<1x64xf32>
    %cst_18 = arith.constant 1.000000e+00 : f32
    %66 = vector.broadcast %cst_18 : f32 to vector<1x64xf32>
    %67 = arith.subf %65, %66 : vector<1x64xf32>
    %68 = vector.extract_strided_slice %60 {offsets = [0, 192], sizes = [1, 64], strides = [1, 1]} : vector<1x256xf32> to vector<1x64xf32>
    %69 = arith.mulf %62, %50 : vector<1x64xf32>
    %70 = arith.mulf %61, %67 : vector<1x64xf32>
    %71 = arith.addf %69, %70 : vector<1x64xf32>
    %72 = math.tanh %71 : vector<1x64xf32>
    %73 = arith.mulf %68, %72 : vector<1x64xf32>
    %74 = vector.extract_strided_slice %6 {offsets = [3, 0], sizes = [1, 256], strides = [1, 1]} : vector<8x256xf32> to vector<1x256xf32>
    %cst_19 = arith.constant dense<0.000000e+00> : vector<1x256xf32>
    %75 = tpu.matmul %73, %1, %cst_19 {dimension_numbers = #tpu.dot_dimension_numbers<[1], [0], [0], [1], [0, 0, 1, 1], [], []>} : vector<1x64xf32>, vector<64x256xf32>, vector<1x256xf32> -> vector<1x256xf32>
    %76 = arith.addf %75, %74 : vector<1x256xf32>
    %77 = arith.negf %76 : vector<1x256xf32>
    %78 = math.exp %77 : vector<1x256xf32>
    %cst_20 = arith.constant 1.000000e+00 : f32
    %79 = vector.broadcast %cst_20 : f32 to vector<1x256xf32>
    %80 = arith.addf %79, %78 : vector<1x256xf32>
    %81 = arith.divf %79, %80 : vector<1x256xf32>
    %82 = vector.extract_strided_slice %81 {offsets = [0, 0], sizes = [1, 64], strides = [1, 1]} : vector<1x256xf32> to vector<1x64xf32>
    %83 = vector.extract_strided_slice %81 {offsets = [0, 64], sizes = [1, 64], strides = [1, 1]} : vector<1x256xf32> to vector<1x64xf32>
    %84 = vector.extract_strided_slice %81 {offsets = [0, 128], sizes = [1, 64], strides = [1, 1]} : vector<1x256xf32> to vector<1x64xf32>
    %cst_21 = arith.constant 2.000000e+00 : f32
    %85 = vector.broadcast %cst_21 : f32 to vector<1x64xf32>
    %86 = arith.mulf %85, %84 : vector<1x64xf32>
    %cst_22 = arith.constant 1.000000e+00 : f32
    %87 = vector.broadcast %cst_22 : f32 to vector<1x64xf32>
    %88 = arith.subf %86, %87 : vector<1x64xf32>
    %89 = vector.extract_strided_slice %81 {offsets = [0, 192], sizes = [1, 64], strides = [1, 1]} : vector<1x256xf32> to vector<1x64xf32>
    %90 = arith.mulf %83, %71 : vector<1x64xf32>
    %91 = arith.mulf %82, %88 : vector<1x64xf32>
    %92 = arith.addf %90, %91 : vector<1x64xf32>
    %93 = math.tanh %92 : vector<1x64xf32>
    %94 = arith.mulf %89, %93 : vector<1x64xf32>
    %95 = vector.extract_strided_slice %6 {offsets = [4, 0], sizes = [1, 256], strides = [1, 1]} : vector<8x256xf32> to vector<1x256xf32>
    %cst_23 = arith.constant dense<0.000000e+00> : vector<1x256xf32>
    %96 = tpu.matmul %94, %1, %cst_23 {dimension_numbers = #tpu.dot_dimension_numbers<[1], [0], [0], [1], [0, 0, 1, 1], [], []>} : vector<1x64xf32>, vector<64x256xf32>, vector<1x256xf32> -> vector<1x256xf32>
    %97 = arith.addf %96, %95 : vector<1x256xf32>
    %98 = arith.negf %97 : vector<1x256xf32>
    %99 = math.exp %98 : vector<1x256xf32>
    %cst_24 = arith.constant 1.000000e+00 : f32
    %100 = vector.broadcast %cst_24 : f32 to vector<1x256xf32>
    %101 = arith.addf %100, %99 : vector<1x256xf32>
    %102 = arith.divf %100, %101 : vector<1x256xf32>
    %103 = vector.extract_strided_slice %102 {offsets = [0, 0], sizes = [1, 64], strides = [1, 1]} : vector<1x256xf32> to vector<1x64xf32>
    %104 = vector.extract_strided_slice %102 {offsets = [0, 64], sizes = [1, 64], strides = [1, 1]} : vector<1x256xf32> to vector<1x64xf32>
    %105 = vector.extract_strided_slice %102 {offsets = [0, 128], sizes = [1, 64], strides = [1, 1]} : vector<1x256xf32> to vector<1x64xf32>
    %cst_25 = arith.constant 2.000000e+00 : f32
    %106 = vector.broadcast %cst_25 : f32 to vector<1x64xf32>
    %107 = arith.mulf %106, %105 : vector<1x64xf32>
    %cst_26 = arith.constant 1.000000e+00 : f32
    %108 = vector.broadcast %cst_26 : f32 to vector<1x64xf32>
    %109 = arith.subf %107, %108 : vector<1x64xf32>
    %110 = vector.extract_strided_slice %102 {offsets = [0, 192], sizes = [1, 64], strides = [1, 1]} : vector<1x256xf32> to vector<1x64xf32>
    %111 = arith.mulf %104, %92 : vector<1x64xf32>
    %112 = arith.mulf %103, %109 : vector<1x64xf32>
    %113 = arith.addf %111, %112 : vector<1x64xf32>
    %114 = math.tanh %113 : vector<1x64xf32>
    %115 = arith.mulf %110, %114 : vector<1x64xf32>
    %116 = vector.extract_strided_slice %6 {offsets = [5, 0], sizes = [1, 256], strides = [1, 1]} : vector<8x256xf32> to vector<1x256xf32>
    %cst_27 = arith.constant dense<0.000000e+00> : vector<1x256xf32>
    %117 = tpu.matmul %115, %1, %cst_27 {dimension_numbers = #tpu.dot_dimension_numbers<[1], [0], [0], [1], [0, 0, 1, 1], [], []>} : vector<1x64xf32>, vector<64x256xf32>, vector<1x256xf32> -> vector<1x256xf32>
    %118 = arith.addf %117, %116 : vector<1x256xf32>
    %119 = arith.negf %118 : vector<1x256xf32>
    %120 = math.exp %119 : vector<1x256xf32>
    %cst_28 = arith.constant 1.000000e+00 : f32
    %121 = vector.broadcast %cst_28 : f32 to vector<1x256xf32>
    %122 = arith.addf %121, %120 : vector<1x256xf32>
    %123 = arith.divf %121, %122 : vector<1x256xf32>
    %124 = vector.extract_strided_slice %123 {offsets = [0, 0], sizes = [1, 64], strides = [1, 1]} : vector<1x256xf32> to vector<1x64xf32>
    %125 = vector.extract_strided_slice %123 {offsets = [0, 64], sizes = [1, 64], strides = [1, 1]} : vector<1x256xf32> to vector<1x64xf32>
    %126 = vector.extract_strided_slice %123 {offsets = [0, 128], sizes = [1, 64], strides = [1, 1]} : vector<1x256xf32> to vector<1x64xf32>
    %cst_29 = arith.constant 2.000000e+00 : f32
    %127 = vector.broadcast %cst_29 : f32 to vector<1x64xf32>
    %128 = arith.mulf %127, %126 : vector<1x64xf32>
    %cst_30 = arith.constant 1.000000e+00 : f32
    %129 = vector.broadcast %cst_30 : f32 to vector<1x64xf32>
    %130 = arith.subf %128, %129 : vector<1x64xf32>
    %131 = vector.extract_strided_slice %123 {offsets = [0, 192], sizes = [1, 64], strides = [1, 1]} : vector<1x256xf32> to vector<1x64xf32>
    %132 = arith.mulf %125, %113 : vector<1x64xf32>
    %133 = arith.mulf %124, %130 : vector<1x64xf32>
    %134 = arith.addf %132, %133 : vector<1x64xf32>
    %135 = math.tanh %134 : vector<1x64xf32>
    %136 = arith.mulf %131, %135 : vector<1x64xf32>
    %137 = vector.extract_strided_slice %6 {offsets = [6, 0], sizes = [1, 256], strides = [1, 1]} : vector<8x256xf32> to vector<1x256xf32>
    %cst_31 = arith.constant dense<0.000000e+00> : vector<1x256xf32>
    %138 = tpu.matmul %136, %1, %cst_31 {dimension_numbers = #tpu.dot_dimension_numbers<[1], [0], [0], [1], [0, 0, 1, 1], [], []>} : vector<1x64xf32>, vector<64x256xf32>, vector<1x256xf32> -> vector<1x256xf32>
    %139 = arith.addf %138, %137 : vector<1x256xf32>
    %140 = arith.negf %139 : vector<1x256xf32>
    %141 = math.exp %140 : vector<1x256xf32>
    %cst_32 = arith.constant 1.000000e+00 : f32
    %142 = vector.broadcast %cst_32 : f32 to vector<1x256xf32>
    %143 = arith.addf %142, %141 : vector<1x256xf32>
    %144 = arith.divf %142, %143 : vector<1x256xf32>
    %145 = vector.extract_strided_slice %144 {offsets = [0, 0], sizes = [1, 64], strides = [1, 1]} : vector<1x256xf32> to vector<1x64xf32>
    %146 = vector.extract_strided_slice %144 {offsets = [0, 64], sizes = [1, 64], strides = [1, 1]} : vector<1x256xf32> to vector<1x64xf32>
    %147 = vector.extract_strided_slice %144 {offsets = [0, 128], sizes = [1, 64], strides = [1, 1]} : vector<1x256xf32> to vector<1x64xf32>
    %cst_33 = arith.constant 2.000000e+00 : f32
    %148 = vector.broadcast %cst_33 : f32 to vector<1x64xf32>
    %149 = arith.mulf %148, %147 : vector<1x64xf32>
    %cst_34 = arith.constant 1.000000e+00 : f32
    %150 = vector.broadcast %cst_34 : f32 to vector<1x64xf32>
    %151 = arith.subf %149, %150 : vector<1x64xf32>
    %152 = vector.extract_strided_slice %144 {offsets = [0, 192], sizes = [1, 64], strides = [1, 1]} : vector<1x256xf32> to vector<1x64xf32>
    %153 = arith.mulf %146, %134 : vector<1x64xf32>
    %154 = arith.mulf %145, %151 : vector<1x64xf32>
    %155 = arith.addf %153, %154 : vector<1x64xf32>
    %156 = math.tanh %155 : vector<1x64xf32>
    %157 = arith.mulf %152, %156 : vector<1x64xf32>
    %158 = vector.extract_strided_slice %6 {offsets = [7, 0], sizes = [1, 256], strides = [1, 1]} : vector<8x256xf32> to vector<1x256xf32>
    %cst_35 = arith.constant dense<0.000000e+00> : vector<1x256xf32>
    %159 = tpu.matmul %157, %1, %cst_35 {dimension_numbers = #tpu.dot_dimension_numbers<[1], [0], [0], [1], [0, 0, 1, 1], [], []>} : vector<1x64xf32>, vector<64x256xf32>, vector<1x256xf32> -> vector<1x256xf32>
    %160 = arith.addf %159, %158 : vector<1x256xf32>
    %161 = arith.negf %160 : vector<1x256xf32>
    %162 = math.exp %161 : vector<1x256xf32>
    %cst_36 = arith.constant 1.000000e+00 : f32
    %163 = vector.broadcast %cst_36 : f32 to vector<1x256xf32>
    %164 = arith.addf %163, %162 : vector<1x256xf32>
    %165 = arith.divf %163, %164 : vector<1x256xf32>
    %166 = vector.extract_strided_slice %165 {offsets = [0, 0], sizes = [1, 64], strides = [1, 1]} : vector<1x256xf32> to vector<1x64xf32>
    %167 = vector.extract_strided_slice %165 {offsets = [0, 64], sizes = [1, 64], strides = [1, 1]} : vector<1x256xf32> to vector<1x64xf32>
    %168 = vector.extract_strided_slice %165 {offsets = [0, 128], sizes = [1, 64], strides = [1, 1]} : vector<1x256xf32> to vector<1x64xf32>
    %cst_37 = arith.constant 2.000000e+00 : f32
    %169 = vector.broadcast %cst_37 : f32 to vector<1x64xf32>
    %170 = arith.mulf %169, %168 : vector<1x64xf32>
    %cst_38 = arith.constant 1.000000e+00 : f32
    %171 = vector.broadcast %cst_38 : f32 to vector<1x64xf32>
    %172 = arith.subf %170, %171 : vector<1x64xf32>
    %173 = vector.extract_strided_slice %165 {offsets = [0, 192], sizes = [1, 64], strides = [1, 1]} : vector<1x256xf32> to vector<1x64xf32>
    %174 = arith.mulf %167, %155 : vector<1x64xf32>
    %175 = arith.mulf %166, %172 : vector<1x64xf32>
    %176 = arith.addf %174, %175 : vector<1x64xf32>
    %177 = math.tanh %176 : vector<1x64xf32>
    %178 = arith.mulf %173, %177 : vector<1x64xf32>
    %cst_39 = arith.constant dense<0.000000e+00> : vector<1x256xf32>
    %179 = tpu.matmul %178, %1, %cst_39 {dimension_numbers = #tpu.dot_dimension_numbers<[1], [0], [0], [1], [0, 0, 1, 1], [], []>} : vector<1x64xf32>, vector<64x256xf32>, vector<1x256xf32> -> vector<1x256xf32>
    %180 = arith.addf %179, %2 : vector<1x256xf32>
    %181 = arith.negf %180 : vector<1x256xf32>
    %182 = math.exp %181 : vector<1x256xf32>
    %cst_40 = arith.constant 1.000000e+00 : f32
    %183 = vector.broadcast %cst_40 : f32 to vector<1x256xf32>
    %184 = arith.addf %183, %182 : vector<1x256xf32>
    %185 = arith.divf %183, %184 : vector<1x256xf32>
    %186 = vector.extract_strided_slice %185 {offsets = [0, 0], sizes = [1, 64], strides = [1, 1]} : vector<1x256xf32> to vector<1x64xf32>
    %187 = vector.extract_strided_slice %185 {offsets = [0, 64], sizes = [1, 64], strides = [1, 1]} : vector<1x256xf32> to vector<1x64xf32>
    %188 = vector.extract_strided_slice %185 {offsets = [0, 128], sizes = [1, 64], strides = [1, 1]} : vector<1x256xf32> to vector<1x64xf32>
    %cst_41 = arith.constant 2.000000e+00 : f32
    %189 = vector.broadcast %cst_41 : f32 to vector<1x64xf32>
    %190 = arith.mulf %189, %188 : vector<1x64xf32>
    %cst_42 = arith.constant 1.000000e+00 : f32
    %191 = vector.broadcast %cst_42 : f32 to vector<1x64xf32>
    %192 = arith.subf %190, %191 : vector<1x64xf32>
    %193 = vector.extract_strided_slice %185 {offsets = [0, 192], sizes = [1, 64], strides = [1, 1]} : vector<1x256xf32> to vector<1x64xf32>
    %194 = arith.mulf %187, %176 : vector<1x64xf32>
    %195 = arith.mulf %186, %192 : vector<1x64xf32>
    %196 = arith.addf %194, %195 : vector<1x64xf32>
    %197 = math.tanh %196 : vector<1x64xf32>
    %198 = arith.mulf %193, %197 : vector<1x64xf32>
    %199 = tpu.concatenate %52, %73, %94, %115, %136, %157, %178, %198 in 0 : vector<1x64xf32>, vector<1x64xf32>, vector<1x64xf32>, vector<1x64xf32>, vector<1x64xf32>, vector<1x64xf32>, vector<1x64xf32>, vector<1x64xf32> -> vector<8x64xf32>
    %c0_43 = arith.constant 0 : index
    %c0_44 = arith.constant 0 : index
    %200 = vector.load %arg2[%c0_43, %c0_44] : memref<344x128xf32, #tpu.memory_space<vmem>>, vector<64x128xf32>
    %c64 = arith.constant 64 : index
    %c0_45 = arith.constant 0 : index
    %201 = vector.load %arg2[%c64, %c0_45] : memref<344x128xf32, #tpu.memory_space<vmem>>, vector<128x128xf32>
    %c192 = arith.constant 192 : index
    %c0_46 = arith.constant 0 : index
    %202 = vector.load %arg2[%c192, %c0_46] : memref<344x128xf32, #tpu.memory_space<vmem>>, vector<128x128xf32>
    %c320 = arith.constant 320 : index
    %c0_47 = arith.constant 0 : index
    %203 = vector.load %arg2[%c320, %c0_47] : memref<344x128xf32, #tpu.memory_space<vmem>>, vector<1x128xf32>
    %c328 = arith.constant 328 : index
    %c0_48 = arith.constant 0 : index
    %204 = vector.load %arg2[%c328, %c0_48] : memref<344x128xf32, #tpu.memory_space<vmem>>, vector<1x128xf32>
    %c336 = arith.constant 336 : index
    %c0_49 = arith.constant 0 : index
    %205 = vector.load %arg2[%c336, %c0_49] : memref<344x128xf32, #tpu.memory_space<vmem>>, vector<1x128xf32>
    %cst_50 = arith.constant dense<0.000000e+00> : vector<8x128xf32>
    %206 = tpu.matmul %199, %200, %cst_50 {dimension_numbers = #tpu.dot_dimension_numbers<[1], [0], [0], [1], [0, 0, 1, 1], [], []>} : vector<8x64xf32>, vector<64x128xf32>, vector<8x128xf32> -> vector<8x128xf32>
    %207 = vector.broadcast %203 : vector<1x128xf32> to vector<8x128xf32>
    %208 = arith.addf %206, %207 : vector<8x128xf32>
    %cst_51 = arith.constant 0.000000e+00 : f32
    %209 = vector.broadcast %cst_51 : f32 to vector<8x128xf32>
    %210 = arith.maximumf %208, %209 : vector<8x128xf32>
    %cst_52 = arith.constant dense<0.000000e+00> : vector<8x128xf32>
    %211 = tpu.matmul %210, %201, %cst_52 {dimension_numbers = #tpu.dot_dimension_numbers<[1], [0], [0], [1], [0, 0, 1, 1], [], []>} : vector<8x128xf32>, vector<128x128xf32>, vector<8x128xf32> -> vector<8x128xf32>
    %212 = vector.broadcast %204 : vector<1x128xf32> to vector<8x128xf32>
    %213 = arith.addf %211, %212 : vector<8x128xf32>
    %cst_53 = arith.constant 0.000000e+00 : f32
    %214 = vector.broadcast %cst_53 : f32 to vector<8x128xf32>
    %215 = arith.maximumf %213, %214 : vector<8x128xf32>
    %cst_54 = arith.constant dense<0.000000e+00> : vector<8x128xf32>
    %216 = tpu.matmul %215, %202, %cst_54 {dimension_numbers = #tpu.dot_dimension_numbers<[1], [0], [0], [1], [0, 0, 1, 1], [], []>} : vector<8x128xf32>, vector<128x128xf32>, vector<8x128xf32> -> vector<8x128xf32>
    %217 = vector.broadcast %205 : vector<1x128xf32> to vector<8x128xf32>
    %218 = arith.addf %216, %217 : vector<8x128xf32>
    %219 = vector.extract_strided_slice %218 {offsets = [0, 0], sizes = [8, 1], strides = [1, 1]} : vector<8x128xf32> to vector<8x1xf32>
    %c0_55 = arith.constant 0 : index
    %c0_56 = arith.constant 0 : index
    %220 = vector.load %arg3[%c0_55, %c0_56] : memref<8x1xf32, #tpu.memory_space<vmem>>, vector<8x1xf32>
    tpu.vector_store %arg3[%c0_55, %c0_56], %219 {strides = array<i32>} : memref<8x1xf32, #tpu.memory_space<vmem>>, vector<8x1xf32>,
    return
  }
}

</mosaic_0001>

<bundles_post_ra>
// kernel: tpu_custom_call.1
= control target key start
LH: loop header
LB: loop body
LE: loop exit
PB: predicated region body
PF: predicated region fallthrough
CT: control target
= control target key end

     0   :  { %8 = vsyncpa [#allocation3], 0  ;;  %s2118_s0 = inlined_call_operand.hbm [shape: f32[8,32], index: 0, kind: input, shape index: {}]   ;;  %s2119_s1 = inlined_call_operand.hbm [shape: f32[104,256], index: 1, kind: input, shape index: {}]   ;;  %s2120_s2 = inlined_call_operand.hbm [shape: f32[344,128], index: 2, kind: input, shape index: {}]   ;;  %s2121_s3 = inlined_call_operand.vmem [shape: f32[8,1], index: 3, kind: output, shape index: {}]  }
   0x1   :  { %9 = vsyncpa [#allocation5], 0  ;;  %s1867_s12 = smov [#allocation4]   ;;  %s1797_s16 = scalar_lea.hbm %s2119_s1, 3328 }
   0x2   :  { %s25_s13 = sshll.u32 %s1867_s12, 4  ;;  %p1798_p0 = scmp.ne.s32.totalorder %s2119_s1, %s1797_s16  ;;  %s26_s13 = int_to_ptr.vmem [resolvable:$true] %s25_s13 }
   0x3   :  { %p1801_p1 = scmp.lt.u32.totalorder %s1797_s16, %s2119_s1 }
   0x5   :  { %p1803_p2 = pnand %p1801_p1, %p1798_p0 }
   0x7   :  { %1806 = shalt.err (!%p1803_p2)
}
   0x8   :  { %s1807_s21 = scalar_lea.vmem %s26_s13, 3328  ;;  %p1812_p4 = scmp.lt.s32.totalorder %s26_s13, %s26_s13 }
   0x9   :  { %p1808_p3 = scmp.ne.s32.totalorder %s26_s13, %s1807_s21  ;;  %p1813_p5 = scmp.lt.s32.totalorder %s1807_s21, %s1807_s21 }
   0xb   :  { %p1814_p6 = por %p1813_p5, %p1812_p4 }
   0xd   :  { %p1815_p7 = pnand %p1814_p6, %p1808_p3 }
   0xf   :  { %1818 = shalt.err (!%p1815_p7)
}
  0x10   :  { %s1868_s22 = smov 256   ;;  %s1869_s23 = smov 16  }
  0x11   :  { %31 = dma.hbm_to_vmem [thread:$0]  %s2119_s1, 3328, %s26_s13, [#allocation5], %s1868_s22, %s1868_s22, %s1869_s23  }
  0x12   :  { %s1870_s26 = smov [#allocation2]   ;;  %s1871_s28 = smov [#allocation6]  }
  0x13   :  { %s16_s27 = sshll.u32 %s1870_s26, 4  ;;  %s37_s29 = sshll.u32 %s1871_s28, 4  ;;  %s17_s27 = int_to_ptr.vmem [resolvable:$true] %s16_s27  ;;  %s38_s29 = int_to_ptr.vmem [resolvable:$true] %s37_s29 }
  0x14   :  { %s1819_s5 = scalar_lea.hbm %s2118_s0, 128 }
  0x15   :  { %p1820_p8 = scmp.ne.s32.totalorder %s2118_s0, %s1819_s5  ;;  %p1823_p9 = scmp.lt.u32.totalorder %s1819_s5, %s2118_s0 }
  0x17   :  { %p1825_p10 = pnand %p1823_p9, %p1820_p8 }
  0x19   :  { %1828 = shalt.err (!%p1825_p10)
}
  0x1a   :  { %s1829_s1 = scalar_lea.vmem %s17_s27, 128  ;;  %p1834_p12 = scmp.lt.s32.totalorder %s17_s27, %s17_s27 }
  0x1b   :  { %p1830_p11 = scmp.ne.s32.totalorder %s17_s27, %s1829_s1  ;;  %p1835_p13 = scmp.lt.s32.totalorder %s1829_s1, %s1829_s1 }
  0x1d   :  { %p1836_p0 = por %p1835_p13, %p1834_p12 }
  0x1f   :  { %p1837_p1 = pnand %p1836_p0, %p1830_p11 }
  0x21   :  { %1840 = shalt.err (!%p1837_p1)
}
  0x22   :  { %19 = dma.hbm_to_vmem [thread:$0]  %s2118_s0, 128, %s17_s27, [#allocation3]  }
  0x23   :  { %s1841_s14 = scalar_lea.hbm %s2120_s2, 5504 }
  0x24   :  { %p1842_p2 = scmp.ne.s32.totalorder %s2120_s2, %s1841_s14  ;;  %p1845_p3 = scmp.lt.u32.totalorder %s1841_s14, %s2120_s2 }
  0x26   :  { %p1847_p4 = pnand %p1845_p3, %p1842_p2 }
  0x28   :  { %1850 = shalt.err (!%p1847_p4)
}
  0x29   :  { %s1851_s19 = scalar_lea.vmem %s38_s29, 5504  ;;  %p1856_p6 = scmp.lt.s32.totalorder %s38_s29, %s38_s29 }
  0x2a   :  { %p1852_p5 = scmp.ne.s32.totalorder %s38_s29, %s1851_s19  ;;  %p1857_p7 = scmp.lt.s32.totalorder %s1851_s19, %s1851_s19 }
  0x2c   :  { %p1858_p8 = por %p1857_p7, %p1856_p6 }
  0x2e   :  { %p1859_p9 = pnand %p1858_p8, %p1852_p5 }
  0x30   :  { %1862 = shalt.err (!%p1859_p9)
}
  0x31   :  { %s1872_s0 = smov 128   ;;  %s1873_s20 = smov 8  }
  0x32   :  { %43 = dma.hbm_to_vmem [thread:$0]  %s2120_s2, 5504, %s38_s29, [#allocation5], %s1872_s0, %s1872_s0, %s1873_s20  }
  0x33   :  { %1863 = dma.done.wait [#allocation3], 128  }
  0x34   :  { %1864 = vsyncadd [#allocation3], 4294967168 }
  0x35   :  { %1865 = dma.done.wait [#allocation5], 8832  }
  0x36   :  { %1866 = vsyncadd [#allocation5], 4294958464  ;;  %v1874_v0 = vmov 0.0   ;;  %v54_v1 = vld [vmem:[#allocation4 + $0x8] sm:$0xff]  ;;  %v56_v2 = vld [vmem:[#allocation4 + $0x18] sm:$0xff]  ;;  %vm91_vm0 = vcmask 261120   ;;  %v81_v14 = vlaneseq }
  0x37   :  { %159 = vmatprep.mubr.f32.mxu0 %v1874_v0  ;;  %272 = vmatprep.mubr.f32.mxu1 %v1874_v0  ;;  %v53_v3 = vld [vmem:[#allocation4] sm:$0xff]  ;;  %v1500_v4 = vpack.c.bf16 %v56_v2, %v54_v1  ;;  %v55_v5 = vld [vmem:[#allocation4 + $0x10] sm:$0xff]  ;;  %v58_v6 = vld [vmem:[#allocation4 + $0x28] sm:$0xff]  ;;  %s1875_s2 = smov 64   ;;  %v189_v36 = vsel %vm91_vm0, 1.0, %v1874_v0  ;;  %vm205_vm1 = vcmask 523264  }
  0x38   :  { %v60_v7 = vld [vmem:[#allocation4 + $0x38] sm:$0xff]  ;;  %v1502_v8 = vpack.c.bf16 %v55_v5, %v53_v3  ;;  %v57_v10 = vld [vmem:[#allocation4 + $0x20] sm:$0xff]  ;;  %v59_v11 = vld [vmem:[#allocation4 + $0x30] sm:$0xff]  ;;  %v82_v15 = vshrl.u32 %v81_v14, 7  ;;  %vm1034_vm2 = vcmask 1040384   ;;  %vm1036_vm3 = vcmask 1041408  }
  0x39   :  { %v1504_v9 = vpack.c.bf16 %v60_v7, %v58_v6  ;;  %1501 = vmatprep.subr.bf16.mxu0 %v1500_v4  ;;  %v1506_v12 = vpack.c.bf16 %v59_v11, %v57_v10  ;;  %v79_v13 = vld [vmem:[#allocation2] sm:$0xff]  ;;  %v78_v17 = vld [vmem:[#allocation4 + $0xc0] ss:$8 sm:$0x3]  ;;  %v63_v41 = vld [vmem:[#allocation4 + $0x50] sm:$0xff]  ;;  %vm1038_vm4 = vcmask 1042432  }
  0x3a   :  { %1503 = vmatpush1.bf16.msra.mxu0 %v1502_v8  ;;  %v83_v16 = vsub.s32 0, %v82_v15  ;;  %v87_v18 = vsub.s32 1, %v82_v15  ;;  %v62_v37 = vld [vmem:[#allocation4 + $0x48] sm:$0xff]  ;;  %v64_v38 = vld [vmem:[#allocation4 + $0x58] sm:$0xff]  ;;  %v61_v39 = vld [vmem:[#allocation4 + $0x40] sm:$0xff]  ;;  %vm1040_vm5 = vcmask 1043456  }
  0x3b   :  { %1505 = vmatprep.subr.bf16.mxu0 %v1504_v9  ;;  %v1954_v40 = vpack.c.bf16 %v64_v38, %v62_v37  ;;  %v66_v42 = vld [vmem:[#allocation4 + $0x68] sm:$0xff]  ;;  %v68_v43 = vld [vmem:[#allocation4 + $0x78] sm:$0xff]  ;;  %v1956_v44 = vpack.c.bf16 %v63_v41, %v61_v39  ;;  %v65_v46 = vld [vmem:[#allocation4 + $0x60] sm:$0xff]  ;;  %vm1042_vm6 = vcmask 1044480   ;;  %vm1044_vm7 = vcmask 1045504  }
  0x3c   :  { %v1938_v19 = vrot.slane %v78_v17, %v83_v16  ;;  %v1940_v20 = vrot.slane %v78_v17, %v87_v18  ;;  %v1958_v45 = vpack.c.bf16 %v68_v43, %v66_v42  ;;  %v67_v47 = vld [vmem:[#allocation4 + $0x70] sm:$0xff]  ;;  %v70_v48 = vld [vmem:[#allocation4 + $0x88] sm:$0xff]  ;;  %v72_v49 = vld [vmem:[#allocation4 + $0x98] sm:$0xff]  ;;  %vm1877_vm8 = vmmov 0  }
  0x3d   :  { %1509 = vmatprep.subr.bf16.mxu1 %v1954_v40  ;;  %v1963_v50 = vpack.c.bf16 %v67_v47, %v65_v46  ;;  %v1967_v51 = vpack.c.bf16 %v72_v49, %v70_v48  ;;  %v69_v52 = vld [vmem:[#allocation4 + $0x80] sm:$0xff]  ;;  %v71_v53 = vld [vmem:[#allocation4 + $0x90] sm:$0xff]  ;;  %v74_v54 = vld [vmem:[#allocation4 + $0xa8] sm:$0xff]  ;;  %vm1046_vm9 = vcmask 1046528   ;;  %vm1320_vm10 = vcmask 7168  }
  0x3e   :  { %1507 = vmatpush1.bf16.msra.mxu0 %v1506_v12  ;;  %1511 = vmatpush1.bf16.msra.mxu1 %v1956_v44  ;;  %v76_v55 = vld [vmem:[#allocation4 + $0xb8] sm:$0xff]  ;;  %v1971_v56 = vpack.c.bf16 %v71_v53, %v69_v52  ;;  %v73_v58 = vld [vmem:[#allocation4 + $0xa0] sm:$0xff]  ;;  %v75_v59 = vld [vmem:[#allocation4 + $0xb0] sm:$0xff] }
  0x3f   :  { %1525 = vmatprep.subr.bf16.mxu0 %v1954_v40  ;;  %1513 = vmatprep.subr.bf16.mxu1 %v1958_v45  ;;  %v1975_v57 = vpack.c.bf16 %v76_v55, %v74_v54  ;;  %v1979_v60 = vpack.c.bf16 %v75_v59, %v73_v58 }
  0x41   :  { %1328 = vmatmul.mubr.msk.f32.vlgmr.msra.gmra.mrb[0].mxu0 %vm91_vm0, %v79_v13 }
  0x42   :  { %375 = vmatprep.mubr.f32.mxu0 %v1874_v0  ;;  %1527 = vmatpush1.bf16.msra.mxu0 %v1956_v44 }
  0x43   :  { %1529 = vmatprep.subr.bf16.mxu0 %v1958_v45  ;;  %1515 = vmatpush1.bf16.msra.mxu1 %v1963_v50 }
  0x44   :  { %1517 = vmatprep.subr.bf16.mxu1 %v1967_v51 }
  0x46   :  { %1531 = vmatpush1.bf16.msra.mxu0 %v1963_v50 }
  0x47   :  { %1533 = vmatprep.subr.bf16.mxu0 %v1967_v51  ;;  %1519 = vmatpush1.bf16.msra.mxu1 %v1971_v56 }
  0x48   :  { %1521 = vmatprep.subr.bf16.mxu1 %v1975_v57 }
  0x4a   :  { %1535 = vmatpush1.bf16.msra.mxu0 %v1971_v56 }
  0x4b   :  { %1537 = vmatprep.subr.bf16.mxu0 %v1975_v57  ;;  %1523 = vmatpush1.bf16.msra.mxu1 %v1979_v60 }
  0x4c   :  { %1541 = vmatprep.subr.bf16.mxu1 %v1954_v40 }
  0x4e   :  { %1539 = vmatpush1.bf16.msra.mxu0 %v1979_v60 }
  0x4f   :  { %1557 = vmatprep.subr.bf16.mxu0 %v1954_v40 }
 0x114   :  { %v161_v21 = vpop.f32.mrb[0].mxu0 }
 0x115   :  { %v1943_v22 = vadd.f32 %v161_v21, %v1938_v19  ;;  %v163_v23 = vpop.f32.mrb[1].mxu0 }
 0x116   :  { %v1946_v24 = vadd.f32 %v163_v23, %v1940_v20 }
 0x117   :  { %v1329_v25 = vmul.f32 -1.442695, %v1943_v22  ;;  %v201_v6 = vrot.slane %v1943_v22, 1 }
 0x118   :  { %v1330_v26 = vmul.f32 -1.442695, %v1946_v24  ;;  %v202_v8 = vrot.slane %v1946_v24, 1 }
 0x119   :  { %1707 = vpow2.f32 %v1329_v25 }
 0x11a   :  { %1709 = vpow2.f32 %v1330_v26 }
 0x123   :  { %v1708_v27 = vpop.eup %1707 }
 0x124   :  { %v1710_v28 = vpop.eup %1709  ;;  %v172_v30 = vadd.f32 1.0, %v1708_v27 }
 0x125   :  { %v173_v29 = vadd.f32 1.0, %v1710_v28 }
 0x127   :  { %1711 = vrcp.f32 %v173_v29 }
 0x128   :  { %1713 = vrcp.f32 %v172_v30 }
 0x131   :  { %v1712_v31 = vpop.eup %1711 }
 0x132   :  { %v178_v32 = vmul.f32 2.0, %v1712_v31  ;;  %v1714_v34 = vpop.eup %1713 }
 0x133   :  { %v180_v61 = vmul.f32 0.0, %v1714_v34 }
 0x134   :  { %v1331_v33 = vadd.f32 -1.0, %v178_v32 }
 0x136   :  { %v181_v35 = vmul.f32 %v1714_v34, %v1331_v33  ;;  %v305_v34 = vrot.slane %v1943_v22, 2 }
 0x138   :  { %183 = vrot.lane.b32.xlu0 %v181_v35, %s1875_s2 }
 0x13c   :  { %191 = vrot.lane.b32.xlu0 %v189_v36, %s1875_s2  ;;  %v306_v36 = vrot.slane %v1946_v24, 2 }
 0x1aa   :  { %v184_v62 = vpop.permute.xlu0 %183 }
 0x1ab   :  { %v186_v63 = vadd.f32 %v184_v62, %v180_v61 }
 0x1ad   :  { %1715 = vtanh.f32 %v186_v63 }
 0x1ae   :  { %v192_v3 = vpop.permute.xlu0 %191 }
 0x1af   :  { %v194_v18 = vmul.f32 %v192_v3, %v186_v63 }
 0x1b7   :  { %v1716_v1 = vpop.eup %1715 }
 0x1b8   :  { %v188_v2 = vmul.f32 %v1716_v1, %v1712_v31 }
 0x1ba   :  { %v195_v4 = vmul.f32 %v192_v3, %v188_v2  ;;  %v408_v2 = vrot.slane %v1943_v22, 3 }
 0x1bc   :  { %197 = vrot.lane.b32.xlu1 %v195_v4, %s1875_s2  ;;  %v409_v4 = vrot.slane %v1946_v24, 3 }
 0x22e   :  { %v198_v5 = vpop.permute.xlu1 %197 }
 0x22f   :  { %1332 = vmatmul.mubr.msk.f32.vlgmr.msra.gmra.mrb[0].mxu1 %vm205_vm1, %v198_v5 }
 0x230   :  { %1543 = vmatpush1.bf16.msra.mxu1 %v1956_v44  ;;  %478 = vmatprep.mubr.f32.mxu1 %v1874_v0 }
 0x231   :  { %1545 = vmatprep.subr.bf16.mxu1 %v1958_v45 }
 0x234   :  { %1547 = vmatpush1.bf16.msra.mxu1 %v1963_v50 }
 0x235   :  { %1549 = vmatprep.subr.bf16.mxu1 %v1967_v51 }
 0x238   :  { %1551 = vmatpush1.bf16.msra.mxu1 %v1971_v56 }
 0x239   :  { %1553 = vmatprep.subr.bf16.mxu1 %v1975_v57 }
 0x23c   :  { %1555 = vmatpush1.bf16.msra.mxu1 %v1979_v60 }
 0x23d   :  { %1573 = vmatprep.subr.bf16.mxu1 %v1954_v40 }
 0x302   :  { %v274_v7 = vpop.f32.mrb[0].mxu1 }
 0x303   :  { %v275_v9 = vadd.f32 %v274_v7, %v201_v6  ;;  %v276_v10 = vpop.f32.mrb[1].mxu1 }
 0x304   :  { %v277_v11 = vadd.f32 %v276_v10, %v202_v8 }
 0x305   :  { %v1333_v12 = vmul.f32 -1.442695, %v275_v9 }
 0x306   :  { %v1334_v13 = vmul.f32 -1.442695, %v277_v11 }
 0x307   :  { %1717 = vpow2.f32 %v1333_v12 }
 0x308   :  { %1719 = vpow2.f32 %v1334_v13 }
 0x311   :  { %v1718_v14 = vpop.eup %1717 }
 0x312   :  { %v1720_v15 = vpop.eup %1719  ;;  %v285_v16 = vadd.f32 1.0, %v1718_v14 }
 0x313   :  { %v286_v17 = vadd.f32 1.0, %v1720_v15 }
 0x314   :  { %1721 = vrcp.f32 %v285_v16 }
 0x315   :  { %1723 = vrcp.f32 %v286_v17 }
 0x31e   :  { %v1722_v21 = vpop.eup %1721 }
 0x31f   :  { %v1724_v23 = vpop.eup %1723  ;;  %v293_v25 = vmul.f32 %v1722_v21, %v194_v18 }
 0x320   :  { %v291_v26 = vmul.f32 2.0, %v1724_v23 }
 0x322   :  { %v1335_v27 = vadd.f32 -1.0, %v291_v26 }
 0x324   :  { %v294_v28 = vmul.f32 %v1722_v21, %v1335_v27 }
 0x326   :  { %296 = vrot.lane.b32.xlu1 %v294_v28, %s1875_s2 }
 0x398   :  { %v297_v29 = vpop.permute.xlu1 %296 }
 0x399   :  { %v299_v30 = vadd.f32 %v297_v29, %v293_v25 }
 0x39b   :  { %1725 = vtanh.f32 %v299_v30 }
 0x3a5   :  { %v1726_v31 = vpop.eup %1725 }
 0x3a6   :  { %v2002_v32 = vmul.f32 %v1726_v31, %v1724_v23 }
 0x3a8   :  { %303 = vrot.lane.b32.xlu0 %v2002_v32, %s1875_s2 }
 0x41a   :  { %v304_v33 = vpop.permute.xlu0 %303 }
 0x41b   :  { %1336 = vmatmul.mubr.msk.f32.vlgmr.msra.gmra.mrb[2].mxu0 %vm205_vm1, %v304_v33 }
 0x41c   :  { %1559 = vmatpush1.bf16.msra.mxu0 %v1956_v44  ;;  %581 = vmatprep.mubr.f32.mxu0 %v1874_v0 }
 0x41d   :  { %1561 = vmatprep.subr.bf16.mxu0 %v1958_v45 }
 0x420   :  { %1563 = vmatpush1.bf16.msra.mxu0 %v1963_v50 }
 0x421   :  { %1565 = vmatprep.subr.bf16.mxu0 %v1967_v51 }
 0x424   :  { %1567 = vmatpush1.bf16.msra.mxu0 %v1971_v56 }
 0x425   :  { %1569 = vmatprep.subr.bf16.mxu0 %v1975_v57 }
 0x428   :  { %1571 = vmatpush1.bf16.msra.mxu0 %v1979_v60 }
 0x429   :  { %1589 = vmatprep.subr.bf16.mxu0 %v1954_v40 }
 0x4ee   :  { %v377_v35 = vpop.f32.mrb[2].mxu0 }
 0x4ef   :  { %v378_v37 = vadd.f32 %v377_v35, %v305_v34  ;;  %v379_v38 = vpop.f32.mrb[3].mxu0  ;;  %v512_v35 = vrot.slane %v1946_v24, 4 }
 0x4f0   :  { %v380_v39 = vadd.f32 %v379_v38, %v306_v36 }
 0x4f1   :  { %v1337_v41 = vmul.f32 -1.442695, %v378_v37 }
 0x4f2   :  { %v1338_v42 = vmul.f32 -1.442695, %v380_v39 }
 0x4f3   :  { %1727 = vpow2.f32 %v1337_v41 }
 0x4f4   :  { %1729 = vpow2.f32 %v1338_v42 }
 0x4fd   :  { %v1728_v43 = vpop.eup %1727 }
 0x4fe   :  { %v1730_v46 = vpop.eup %1729  ;;  %v388_v48 = vadd.f32 1.0, %v1728_v43 }
 0x4ff   :  { %v389_v47 = vadd.f32 1.0, %v1730_v46 }
 0x501   :  { %1731 = vrcp.f32 %v389_v47 }
 0x502   :  { %1733 = vrcp.f32 %v388_v48 }
 0x50b   :  { %v1732_v49 = vpop.eup %1731 }
 0x50c   :  { %v394_v52 = vmul.f32 2.0, %v1732_v49  ;;  %v1734_v54 = vpop.eup %1733 }
 0x50d   :  { %v396_v58 = vmul.f32 %v1734_v54, %v299_v30 }
 0x50e   :  { %v1339_v53 = vadd.f32 -1.0, %v394_v52 }
 0x510   :  { %v397_v55 = vmul.f32 %v1734_v54, %v1339_v53 }
 0x512   :  { %399 = vrot.lane.b32.xlu1 %v397_v55, %s1875_s2 }
 0x584   :  { %v400_v59 = vpop.permute.xlu1 %399 }
 0x585   :  { %v402_v61 = vadd.f32 %v400_v59, %v396_v58 }
 0x587   :  { %1735 = vtanh.f32 %v402_v61 }
 0x591   :  { %v1736_v62 = vpop.eup %1735 }
 0x592   :  { %v404_v63 = vmul.f32 %v1736_v62, %v1732_v49 }
 0x594   :  { %406 = vrot.lane.b32.xlu0 %v404_v63, %s1875_s2  ;;  %v1019_v27 = vrot.slane %v404_v63, 7 }
 0x596   :  { %v1035_v30 = vsel %vm1034_vm2, %v2002_v32, %v1019_v27  ;;  %v511_v32 = vrot.slane %v1943_v22, 4 }
 0x606   :  { %v407_v1 = vpop.permute.xlu0 %406 }
 0x607   :  { %1340 = vmatmul.mubr.msk.f32.vlgmr.msra.gmra.mrb[2].mxu1 %vm205_vm1, %v407_v1 }
 0x608   :  { %1575 = vmatpush1.bf16.msra.mxu1 %v1956_v44  ;;  %684 = vmatprep.mubr.f32.mxu1 %v1874_v0 }
 0x609   :  { %1577 = vmatprep.subr.bf16.mxu1 %v1958_v45 }
 0x60c   :  { %1579 = vmatpush1.bf16.msra.mxu1 %v1963_v50 }
 0x60d   :  { %1581 = vmatprep.subr.bf16.mxu1 %v1967_v51 }
 0x610   :  { %1583 = vmatpush1.bf16.msra.mxu1 %v1971_v56 }
 0x611   :  { %1585 = vmatprep.subr.bf16.mxu1 %v1975_v57 }
 0x614   :  { %1587 = vmatpush1.bf16.msra.mxu1 %v1979_v60 }
 0x615   :  { %1605 = vmatprep.subr.bf16.mxu1 %v1954_v40 }
 0x6da   :  { %v480_v3 = vpop.f32.mrb[2].mxu1 }
 0x6db   :  { %v481_v5 = vadd.f32 %v480_v3, %v408_v2  ;;  %v482_v6 = vpop.f32.mrb[3].mxu1  ;;  %v614_v2 = vrot.slane %v1943_v22, 5 }
 0x6dc   :  { %v483_v7 = vadd.f32 %v482_v6, %v409_v4  ;;  %v615_v4 = vrot.slane %v1946_v24, 5 }
 0x6dd   :  { %v1341_v8 = vmul.f32 -1.442695, %v481_v5 }
 0x6de   :  { %v1342_v9 = vmul.f32 -1.442695, %v483_v7 }
 0x6df   :  { %1737 = vpow2.f32 %v1341_v8 }
 0x6e0   :  { %1739 = vpow2.f32 %v1342_v9 }
 0x6e9   :  { %v1738_v10 = vpop.eup %1737 }
 0x6ea   :  { %v1740_v11 = vpop.eup %1739  ;;  %v491_v13 = vadd.f32 1.0, %v1738_v10 }
 0x6eb   :  { %v492_v12 = vadd.f32 1.0, %v1740_v11 }
 0x6ed   :  { %1741 = vrcp.f32 %v492_v12 }
 0x6ee   :  { %1743 = vrcp.f32 %v491_v13 }
 0x6f7   :  { %v1742_v14 = vpop.eup %1741 }
 0x6f8   :  { %v497_v15 = vmul.f32 2.0, %v1742_v14  ;;  %v1744_v17 = vpop.eup %1743 }
 0x6f9   :  { %v499_v21 = vmul.f32 %v1744_v17, %v402_v61 }
 0x6fa   :  { %v1343_v16 = vadd.f32 -1.0, %v497_v15 }
 0x6fc   :  { %v500_v18 = vmul.f32 %v1744_v17, %v1343_v16 }
 0x6fe   :  { %502 = vrot.lane.b32.xlu1 %v500_v18, %s1875_s2 }
 0x770   :  { %v503_v23 = vpop.permute.xlu1 %502 }
 0x771   :  { %v505_v25 = vadd.f32 %v503_v23, %v499_v21 }
 0x773   :  { %1745 = vtanh.f32 %v505_v25 }
 0x77d   :  { %v1746_v26 = vpop.eup %1745 }
 0x77e   :  { %v507_v28 = vmul.f32 %v1746_v26, %v1742_v14 }
 0x780   :  { %509 = vrot.lane.b32.xlu0 %v507_v28, %s1875_s2  ;;  %v1021_v29 = vrot.slane %v507_v28, 6 }
 0x782   :  { %v1037_v31 = vsel %vm1036_vm3, %v1035_v30, %v1021_v29 }
 0x7f2   :  { %v510_v33 = vpop.permute.xlu0 %509 }
 0x7f3   :  { %1344 = vmatmul.mubr.msk.f32.vlgmr.msra.gmra.mrb[4].mxu0 %vm205_vm1, %v510_v33 }
 0x7f4   :  { %1591 = vmatpush1.bf16.msra.mxu0 %v1956_v44  ;;  %787 = vmatprep.mubr.f32.mxu0 %v1874_v0 }
 0x7f5   :  { %1593 = vmatprep.subr.bf16.mxu0 %v1958_v45 }
 0x7f8   :  { %1595 = vmatpush1.bf16.msra.mxu0 %v1963_v50 }
 0x7f9   :  { %1597 = vmatprep.subr.bf16.mxu0 %v1967_v51 }
 0x7fc   :  { %1599 = vmatpush1.bf16.msra.mxu0 %v1971_v56 }
 0x7fd   :  { %1601 = vmatprep.subr.bf16.mxu0 %v1975_v57 }
 0x800   :  { %1603 = vmatpush1.bf16.msra.mxu0 %v1979_v60 }
 0x801   :  { %1621 = vmatprep.subr.bf16.mxu0 %v1954_v40 }
 0x8c6   :  { %v583_v34 = vpop.f32.mrb[4].mxu0 }
 0x8c7   :  { %v584_v36 = vadd.f32 %v583_v34, %v511_v32  ;;  %v585_v37 = vpop.f32.mrb[5].mxu0  ;;  %v718_v32 = vrot.slane %v1946_v24, 6 }
 0x8c8   :  { %v586_v38 = vadd.f32 %v585_v37, %v512_v35 }
 0x8c9   :  { %v1345_v39 = vmul.f32 -1.442695, %v584_v36 }
 0x8ca   :  { %v1346_v41 = vmul.f32 -1.442695, %v586_v38 }
 0x8cb   :  { %1747 = vpow2.f32 %v1345_v39 }
 0x8cc   :  { %1749 = vpow2.f32 %v1346_v41 }
 0x8d5   :  { %v1748_v42 = vpop.eup %1747 }
 0x8d6   :  { %v1750_v43 = vpop.eup %1749  ;;  %v594_v47 = vadd.f32 1.0, %v1748_v42 }
 0x8d7   :  { %v595_v46 = vadd.f32 1.0, %v1750_v43 }
 0x8d9   :  { %1751 = vrcp.f32 %v595_v46 }
 0x8da   :  { %1753 = vrcp.f32 %v594_v47 }
 0x8e3   :  { %v1752_v48 = vpop.eup %1751 }
 0x8e4   :  { %v600_v40 = vmul.f32 2.0, %v1752_v48  ;;  %v1754_v52 = vpop.eup %1753 }
 0x8e5   :  { %v602_v54 = vmul.f32 %v1754_v52, %v505_v25 }
 0x8e6   :  { %v1347_v49 = vadd.f32 -1.0, %v600_v40 }
 0x8e8   :  { %v603_v53 = vmul.f32 %v1754_v52, %v1347_v49 }
 0x8ea   :  { %605 = vrot.lane.b32.xlu1 %v603_v53, %s1875_s2  ;;  %v820_v53 = vrot.slane %v1943_v22, 7 }
 0x95c   :  { %v606_v55 = vpop.permute.xlu1 %605 }
 0x95d   :  { %v608_v58 = vadd.f32 %v606_v55, %v602_v54  ;;  %v821_v55 = vrot.slane %v1946_v24, 7 }
 0x95f   :  { %1755 = vtanh.f32 %v608_v58 }
 0x969   :  { %v1756_v59 = vpop.eup %1755 }
 0x96a   :  { %v610_v61 = vmul.f32 %v1756_v59, %v1752_v48 }
 0x96c   :  { %612 = vrot.lane.b32.xlu0 %v610_v61, %s1875_s2  ;;  %v1023_v62 = vrot.slane %v610_v61, 5 }
 0x96e   :  { %v1039_v63 = vsel %vm1038_vm4, %v1037_v31, %v1023_v62  ;;  %v717_v31 = vrot.slane %v1943_v22, 6 }
 0x9de   :  { %v613_v1 = vpop.permute.xlu0 %612 }
 0x9df   :  { %1348 = vmatmul.mubr.msk.f32.vlgmr.msra.gmra.mrb[4].mxu1 %vm205_vm1, %v613_v1 }
 0x9e0   :  { %1607 = vmatpush1.bf16.msra.mxu1 %v1956_v44  ;;  %890 = vmatprep.mubr.f32.mxu1 %v1874_v0 }
 0x9e1   :  { %1609 = vmatprep.subr.bf16.mxu1 %v1958_v45 }
 0x9e4   :  { %1611 = vmatpush1.bf16.msra.mxu1 %v1963_v50 }
 0x9e5   :  { %1613 = vmatprep.subr.bf16.mxu1 %v1967_v51 }
 0x9e8   :  { %1615 = vmatpush1.bf16.msra.mxu1 %v1971_v56 }
 0x9e9   :  { %1617 = vmatprep.subr.bf16.mxu1 %v1975_v57 }
 0x9ec   :  { %1619 = vmatpush1.bf16.msra.mxu1 %v1979_v60 }
 0xab2   :  { %v686_v3 = vpop.f32.mrb[4].mxu1 }
 0xab3   :  { %v687_v5 = vadd.f32 %v686_v3, %v614_v2  ;;  %v688_v6 = vpop.f32.mrb[5].mxu1 }
 0xab4   :  { %v689_v7 = vadd.f32 %v688_v6, %v615_v4 }
 0xab5   :  { %v1349_v8 = vmul.f32 -1.442695, %v687_v5 }
 0xab6   :  { %v1350_v9 = vmul.f32 -1.442695, %v689_v7 }
 0xab7   :  { %1757 = vpow2.f32 %v1349_v8 }
 0xab8   :  { %1759 = vpow2.f32 %v1350_v9 }
 0xac1   :  { %v1758_v10 = vpop.eup %1757 }
 0xac2   :  { %v1760_v11 = vpop.eup %1759  ;;  %v697_v13 = vadd.f32 1.0, %v1758_v10 }
 0xac3   :  { %v698_v12 = vadd.f32 1.0, %v1760_v11 }
 0xac5   :  { %1761 = vrcp.f32 %v698_v12 }
 0xac6   :  { %1763 = vrcp.f32 %v697_v13 }
 0xacf   :  { %v1762_v14 = vpop.eup %1761 }
 0xad0   :  { %v703_v15 = vmul.f32 2.0, %v1762_v14  ;;  %v1764_v17 = vpop.eup %1763 }
 0xad1   :  { %v705_v21 = vmul.f32 %v1764_v17, %v608_v58 }
 0xad2   :  { %v1351_v16 = vadd.f32 -1.0, %v703_v15 }
 0xad4   :  { %v706_v18 = vmul.f32 %v1764_v17, %v1351_v16 }
 0xad6   :  { %708 = vrot.lane.b32.xlu1 %v706_v18, %s1875_s2 }
 0xb48   :  { %v709_v23 = vpop.permute.xlu1 %708 }
 0xb49   :  { %v711_v25 = vadd.f32 %v709_v23, %v705_v21 }
 0xb4b   :  { %1765 = vtanh.f32 %v711_v25 }
 0xb55   :  { %v1766_v26 = vpop.eup %1765 }
 0xb56   :  { %v713_v27 = vmul.f32 %v1766_v26, %v1762_v14 }
 0xb58   :  { %715 = vrot.lane.b32.xlu0 %v713_v27, %s1875_s2  ;;  %v1025_v28 = vrot.slane %v713_v27, 4 }
 0xb5a   :  { %v1041_v29 = vsel %vm1040_vm5, %v1039_v63, %v1025_v28 }
 0xbca   :  { %v716_v30 = vpop.permute.xlu0 %715 }
 0xbcb   :  { %1352 = vmatmul.mubr.msk.f32.vlgmr.msra.gmra.mrb[6].mxu0 %vm205_vm1, %v716_v30 }
 0xbcc   :  { %1623 = vmatpush1.bf16.msra.mxu0 %v1956_v44  ;;  %989 = vmatprep.mubr.f32.mxu0 %v1874_v0 }
 0xbcd   :  { %1625 = vmatprep.subr.bf16.mxu0 %v1958_v45 }
 0xbd0   :  { %1627 = vmatpush1.bf16.msra.mxu0 %v1963_v50 }
 0xbd1   :  { %1629 = vmatprep.subr.bf16.mxu0 %v1967_v51 }
 0xbd4   :  { %1631 = vmatpush1.bf16.msra.mxu0 %v1971_v56 }
 0xbd5   :  { %1633 = vmatprep.subr.bf16.mxu0 %v1975_v57 }
 0xbd8   :  { %1635 = vmatpush1.bf16.msra.mxu0 %v1979_v60 }
 0xc9e   :  { %v789_v33 = vpop.f32.mrb[6].mxu0 }
 0xc9f   :  { %v790_v44 = vadd.f32 %v789_v33, %v717_v31  ;;  %v791_v34 = vpop.f32.mrb[7].mxu0 }
 0xca0   :  { %v792_v35 = vadd.f32 %v791_v34, %v718_v32  ;;  %v1049_v34 = vld [vmem:[#allocation6 + $0x8] sm:$0xff] }
 0xca1   :  { %v1353_v36 = vmul.f32 -1.442695, %v790_v44 }
 0xca2   :  { %v1354_v45 = vmul.f32 -1.442695, %v792_v35  ;;  %v1876_v35 = vmov 0.0|0.0  }
 0xca3   :  { %1767 = vpow2.f32 %v1353_v36  ;;  %1636 = vmatprep.subr.bf16.mxu1 %v1876_v35  ;;  %1648 = vmatprep.subr.bf16.mxu0 %v1876_v35 }
 0xca4   :  { %1769 = vpow2.f32 %v1354_v45  ;;  %v1051_v45 = vld [vmem:[#allocation6 + $0x18] sm:$0xff] }
 0xcad   :  { %v1768_v50 = vpop.eup %1767 }
 0xcae   :  { %v1770_v51 = vpop.eup %1769  ;;  %v800_v56 = vadd.f32 1.0, %v1768_v50 }
 0xcaf   :  { %v801_v37 = vadd.f32 1.0, %v1770_v51  ;;  %v1052_v51 = vld [vmem:[#allocation6 + $0x20] sm:$0xff] }
 0xcb1   :  { %1771 = vrcp.f32 %v801_v37  ;;  %v1053_v37 = vld [vmem:[#allocation6 + $0x28] sm:$0xff] }
 0xcb2   :  { %1773 = vrcp.f32 %v800_v56  ;;  %v1643_v56 = vpack.c.bf16 %v1053_v37, %v1052_v51  ;;  %v1086_v37 = vld [vmem:[#allocation6 + $0x130] sm:$0xff] }
 0xcbb   :  { %v1772_v57 = vpop.eup %1771 }
 0xcbc   :  { %v806_v60 = vmul.f32 2.0, %v1772_v57  ;;  %v1774_v39 = vpop.eup %1773 }
 0xcbd   :  { %v808_v42 = vmul.f32 %v1774_v39, %v711_v25 }
 0xcbe   :  { %v1355_v38 = vadd.f32 -1.0, %v806_v60  ;;  %v1055_v60 = vld [vmem:[#allocation6 + $0x38] sm:$0xff] }
 0xcc0   :  { %v809_v41 = vmul.f32 %v1774_v39, %v1355_v38 }
 0xcc2   :  { %811 = vrot.lane.b32.xlu1 %v809_v41, %s1875_s2 }
 0xd34   :  { %v812_v43 = vpop.permute.xlu1 %811 }
 0xd35   :  { %v814_v46 = vadd.f32 %v812_v43, %v808_v42  ;;  %v1056_v43 = vld [vmem:[#allocation6 + $0x40] sm:$0xff] }
 0xd37   :  { %1775 = vtanh.f32 %v814_v46 }
 0xd41   :  { %v1776_v47 = vpop.eup %1775 }
 0xd42   :  { %v816_v48 = vmul.f32 %v1776_v47, %v1772_v57  ;;  %v1054_v57 = vld [vmem:[#allocation6 + $0x30] sm:$0xff] }
 0xd43   :  { %v1646_v38 = vpack.c.bf16 %v1055_v60, %v1054_v57  ;;  %v1058_v47 = vld [vmem:[#allocation6 + $0x50] sm:$0xff]  ;;  %v1366_v60 = vld [vmem:[#allocation6 + $0x148] ss:$0 sm:$0xff] }
 0xd44   :  { %818 = vrot.lane.b32.xlu0 %v816_v48, %s1875_s2  ;;  %v1027_v40 = vrot.slane %v816_v48, 3 }
 0xd46   :  { %v1043_v49 = vsel %vm1042_vm6, %v1041_v29, %v1027_v40  ;;  %v1059_v40 = vld [vmem:[#allocation6 + $0x58] sm:$0xff] }
 0xdb6   :  { %v819_v52 = vpop.permute.xlu0 %818 }
 0xdb7   :  { %1356 = vmatmul.mubr.msk.f32.vlgmr.msra.gmra.mrb[6].mxu1 %vm205_vm1, %v819_v52  ;;  %v1060_v52 = vld [vmem:[#allocation6 + $0x60] sm:$0xff] }
 0xdb8   :  { %1427 = vmatprep.mubr.msk.f32.mxu1 %vm1877_vm8, %v1874_v0 }
 0xe8a   :  { %v892_v54 = vpop.f32.mrb[6].mxu1 }
 0xe8b   :  { %v893_v58 = vadd.f32 %v892_v54, %v820_v53  ;;  %v894_v59 = vpop.f32.mrb[7].mxu1  ;;  %v1061_v53 = vld [vmem:[#allocation6 + $0x68] sm:$0xff] }
 0xe8c   :  { %v895_v61 = vadd.f32 %v894_v59, %v821_v55  ;;  %v1655_v55 = vpack.c.bf16 %v1061_v53, %v1060_v52  ;;  %v1062_v59 = vld [vmem:[#allocation6 + $0x70] sm:$0xff] }
 0xe8d   :  { %v1357_v62 = vmul.f32 -1.442695, %v893_v58 }
 0xe8e   :  { %v1358_v63 = vmul.f32 -1.442695, %v895_v61  ;;  %v1063_v61 = vld [vmem:[#allocation6 + $0x78] sm:$0xff] }
 0xe8f   :  { %1777 = vpow2.f32 %v1357_v62 }
 0xe90   :  { %1779 = vpow2.f32 %v1358_v63  ;;  %v1658_v63 = vpack.c.bf16 %v1063_v61, %v1062_v59 }
 0xe99   :  { %v1778_v1 = vpop.eup %1777 }
 0xe9a   :  { %v1780_v2 = vpop.eup %1779  ;;  %v903_v4 = vadd.f32 1.0, %v1778_v1 }
 0xe9b   :  { %v904_v3 = vadd.f32 1.0, %v1780_v2  ;;  %v1064_v2 = vld [vmem:[#allocation6 + $0x80] sm:$0xff] }
 0xe9d   :  { %1781 = vrcp.f32 %v904_v3  ;;  %v1065_v3 = vld [vmem:[#allocation6 + $0x88] sm:$0xff] }
 0xe9e   :  { %1783 = vrcp.f32 %v903_v4  ;;  %v1661_v4 = vpack.c.bf16 %v1065_v3, %v1064_v2 }
 0xea7   :  { %v1782_v5 = vpop.eup %1781 }
 0xea8   :  { %v909_v6 = vmul.f32 2.0, %v1782_v5  ;;  %v1784_v22 = vpop.eup %1783 }
 0xea9   :  { %v911_v24 = vmul.f32 %v1784_v22, %v814_v46  ;;  %v1057_v46 = vld [vmem:[#allocation6 + $0x48] sm:$0xff] }
 0xeaa   :  { %v1359_v7 = vadd.f32 -1.0, %v909_v6  ;;  %v1649_v48 = vpack.c.bf16 %v1057_v46, %v1056_v43  ;;  %v1067_v6 = vld [vmem:[#allocation6 + $0x98] sm:$0xff]  ;;  %v1367_v43 = vld [vmem:[#allocation6 + $0x150] ss:$0 sm:$0xff] }
 0xeac   :  { %v912_v8 = vmul.f32 %v1784_v22, %v1359_v7  ;;  %v1068_v22 = vld [vmem:[#allocation6 + $0xa0] sm:$0xff] }
 0xeae   :  { %914 = vrot.lane.b32.xlu1 %v912_v8, %s1875_s2  ;;  %v1069_v8 = vld [vmem:[#allocation6 + $0xa8] sm:$0xff] }
 0xf20   :  { %v915_v9 = vpop.permute.xlu1 %914 }
 0xf21   :  { %v917_v10 = vadd.f32 %v915_v9, %v911_v24  ;;  %v1667_v24 = vpack.c.bf16 %v1069_v8, %v1068_v22 }
 0xf23   :  { %1785 = vtanh.f32 %v917_v10 }
 0xf2d   :  { %v1786_v11 = vpop.eup %1785 }
 0xf2e   :  { %v919_v12 = vmul.f32 %v1786_v11, %v1782_v5  ;;  %v1066_v5 = vld [vmem:[#allocation6 + $0x90] sm:$0xff]  ;;  %v1071_v11 = vld [vmem:[#allocation6 + $0xb8] sm:$0xff] }
 0xf2f   :  { %v1664_v7 = vpack.c.bf16 %v1067_v6, %v1066_v5 }
 0xf30   :  { %921 = vrot.lane.b32.xlu0 %v919_v12, %s1875_s2  ;;  %v1029_v13 = vrot.slane %v919_v12, 2 }
 0xf32   :  { %v2080_v14 = vsel %vm1044_vm7, %v1043_v49, %v1029_v13  ;;  %v1652_v49 = vpack.c.bf16 %v1059_v40, %v1058_v47  ;;  %v1072_v13 = vld [vmem:[#allocation6 + $0xc0] sm:$0xff] }
 0xfa2   :  { %v922_v15 = vpop.permute.xlu0 %921 }
 0xfa3   :  { %1360 = vmatmul.mubr.msk.f32.vlgmr.msra.gmra.mrb[8].mxu0 %vm205_vm1, %v922_v15  ;;  %v1074_v15 = vld [vmem:[#allocation6 + $0xd0] sm:$0xff] }
 0xfa4   :  { %1462 = vmatprep.mubr.msk.f32.mxu0 %vm1877_vm8, %v1874_v0  ;;  %1650 = vmatpush3.bf16.msra.mxu0 %v1649_v48 }
 0xfa5   :  { %1651 = vmatprep.subr.bf16.mxu0 %v1876_v35 }
 0xfa8   :  { %1653 = vmatpush3.bf16.msra.mxu0 %v1652_v49 }
 0xfa9   :  { %1654 = vmatprep.subr.bf16.mxu0 %v1876_v35 }
 0xfac   :  { %1656 = vmatpush3.bf16.msra.mxu0 %v1655_v55 }
 0xfad   :  { %1657 = vmatprep.subr.bf16.mxu0 %v1876_v35 }
 0xfb0   :  { %1659 = vmatpush3.bf16.msra.mxu0 %v1658_v63 }
 0xfb1   :  { %1660 = vmatprep.subr.bf16.mxu0 %v1876_v35 }
 0xfb4   :  { %1662 = vmatpush3.bf16.msra.mxu0 %v1661_v4 }
 0xfb5   :  { %1663 = vmatprep.subr.bf16.mxu0 %v1876_v35 }
 0xfb8   :  { %1665 = vmatpush3.bf16.msra.mxu0 %v1664_v7 }
 0xfb9   :  { %1666 = vmatprep.subr.bf16.mxu0 %v1876_v35 }
 0xfbc   :  { %1668 = vmatpush3.bf16.msra.mxu0 %v1667_v24 }
 0xfbd   :  { %1669 = vmatprep.subr.bf16.mxu0 %v1876_v35 }
0x1076   :  { %v991_v16 = vpop.f32.mrb[8].mxu0 }
0x1077   :  { %v992_v17 = vadd.f32 %v991_v16, %v1938_v19  ;;  %v993_v18 = vpop.f32.mrb[9].mxu0  ;;  %v1048_v19 = vld [vmem:[#allocation6] sm:$0xff] }
0x1078   :  { %v994_v21 = vadd.f32 %v993_v18, %v1940_v20  ;;  %v1050_v20 = vld [vmem:[#allocation6 + $0x10] sm:$0xff]  ;;  %v1637_v36 = vpack.c.bf16 %v1049_v34, %v1048_v19  ;;  %v1085_v19 = vld [vmem:[#allocation6 + $0x128] sm:$0xff] }
0x1079   :  { %v1361_v23 = vmul.f32 -1.442695, %v992_v17  ;;  %v1640_v50 = vpack.c.bf16 %v1051_v45, %v1050_v20  ;;  %v1075_v17 = vld [vmem:[#allocation6 + $0xd8] sm:$0xff]  ;;  %v1364_v20 = vld [vmem:[#allocation6 + $0x140] ss:$0 sm:$0xff] }
0x107a   :  { %v1362_v25 = vmul.f32 -1.442695, %v994_v21  ;;  %1638 = vmatpush3.bf16.msra.mxu1 %v1637_v36  ;;  %v1676_v18 = vpack.c.bf16 %v1075_v17, %v1074_v15  ;;  %v1076_v21 = vld [vmem:[#allocation6 + $0xe0] sm:$0xff] }
0x107b   :  { %1787 = vpow2.f32 %v1361_v23  ;;  %1639 = vmatprep.subr.bf16.mxu1 %v1876_v35  ;;  %v1077_v23 = vld [vmem:[#allocation6 + $0xe8] sm:$0xff] }
0x107c   :  { %1789 = vpow2.f32 %v1362_v25  ;;  %v1679_v25 = vpack.c.bf16 %v1077_v23, %v1076_v21 }
0x107e   :  { %1641 = vmatpush3.bf16.msra.mxu1 %v1640_v50 }
0x107f   :  { %1642 = vmatprep.subr.bf16.mxu1 %v1876_v35 }
0x1082   :  { %1644 = vmatpush3.bf16.msra.mxu1 %v1643_v56  ;;  %v1087_v56 = vld [vmem:[#allocation6 + $0x138] sm:$0xff] }
0x1083   :  { %1645 = vmatprep.subr.bf16.mxu1 %v1876_v35  ;;  %v1694_v57 = vpack.c.bf16 %v1087_v56, %v1086_v37 }
0x1085   :  { %v1788_v26 = vpop.eup %1787 }
0x1086   :  { %v1790_v27 = vpop.eup %1789  ;;  %v1002_v29 = vadd.f32 1.0, %v1788_v26  ;;  %1647 = vmatpush3.bf16.msra.mxu1 %v1646_v38  ;;  %v1079_v26 = vld [vmem:[#allocation6 + $0xf8] sm:$0xff] }
0x1087   :  { %v1003_v28 = vadd.f32 1.0, %v1790_v27  ;;  %1672 = vmatprep.subr.bf16.mxu1 %v1876_v35 }
0x1089   :  { %1791 = vrcp.f32 %v1003_v28  ;;  %v1080_v28 = vld [vmem:[#allocation6 + $0x100] sm:$0xff] }
0x108a   :  { %1793 = vrcp.f32 %v1002_v29  ;;  %v1081_v29 = vld [vmem:[#allocation6 + $0x108] sm:$0xff] }
0x1093   :  { %v1792_v30 = vpop.eup %1791 }
0x1094   :  { %v1008_v31 = vmul.f32 2.0, %v1792_v30  ;;  %v1794_v32 = vpop.eup %1793 }
0x1095   :  { %v1010_v39 = vmul.f32 %v1794_v32, %v917_v10  ;;  %v1070_v10 = vld [vmem:[#allocation6 + $0xb0] sm:$0xff] }
0x1096   :  { %v1363_v33 = vadd.f32 -1.0, %v1008_v31  ;;  %v1670_v12 = vpack.c.bf16 %v1071_v11, %v1070_v10  ;;  %v1082_v31 = vld [vmem:[#allocation6 + $0x110] sm:$0xff] }
0x1098   :  { %v1011_v44 = vmul.f32 %v1794_v32, %v1363_v33  ;;  %1671 = vmatpush3.bf16.msra.mxu0 %v1670_v12  ;;  %v1083_v33 = vld [vmem:[#allocation6 + $0x118] sm:$0xff] }
0x1099   :  { %v1688_v32 = vpack.c.bf16 %v1083_v33, %v1082_v31 }
0x109a   :  { %1013 = vrot.lane.b32.xlu1 %v1011_v44, %s1875_s2  ;;  %v1084_v44 = vld [vmem:[#allocation6 + $0x120] sm:$0xff] }
0x109b   :  { %v1691_v34 = vpack.c.bf16 %v1085_v19, %v1084_v44 }
0x110c   :  { %v1014_v41 = vpop.permute.xlu1 %1013 }
0x110d   :  { %v1016_v42 = vadd.f32 %v1014_v41, %v1010_v39 }
0x110f   :  { %1795 = vtanh.f32 %v1016_v42 }
0x1119   :  { %v1796_v54 = vpop.eup %1795 }
0x111a   :  { %v1018_v58 = vmul.f32 %v1796_v54, %v1792_v30  ;;  %v1685_v30 = vpack.c.bf16 %v1081_v29, %v1080_v28 }
0x111c   :  { %v1032_v62 = vrot.slane %v1018_v58, 1 }
0x111e   :  { %v1047_v1 = vsel %vm1046_vm9, %v2080_v14, %v1032_v62  ;;  %v1073_v14 = vld [vmem:[#allocation6 + $0xc8] sm:$0xff] }
0x111f   :  { %1096 = vrot.lane.b32.xlu0 %v1047_v1, %s1875_s2  ;;  %v1673_v16 = vpack.c.bf16 %v1073_v14, %v1072_v13 }
0x1191   :  { %v1097_v9 = vpop.permute.xlu0 %1096 }
0x1192   :  { %1428 = vmatmul.mubr.msk.f32.vlgmr.msra.gmra.mrb[8].mxu1 %vm205_vm1, %v1097_v9 }
0x1193   :  { %1497 = vmatprep.mubr.msk.f32.mxu1 %vm1877_vm8, %v1874_v0  ;;  %1674 = vmatpush3.bf16.msra.mxu1 %v1673_v16  ;;  %v1078_v0 = vld [vmem:[#allocation6 + $0xf0] sm:$0xff] }
0x1194   :  { %1675 = vmatprep.subr.bf16.mxu1 %v1876_v35  ;;  %v1682_v27 = vpack.c.bf16 %v1079_v26, %v1078_v0 }
0x1197   :  { %1677 = vmatpush3.bf16.msra.mxu1 %v1676_v18 }
0x1198   :  { %1678 = vmatprep.subr.bf16.mxu1 %v1876_v35 }
0x119b   :  { %1680 = vmatpush3.bf16.msra.mxu1 %v1679_v25 }
0x119c   :  { %1681 = vmatprep.subr.bf16.mxu1 %v1876_v35 }
0x119f   :  { %1683 = vmatpush3.bf16.msra.mxu1 %v1682_v27 }
0x11a0   :  { %1684 = vmatprep.subr.bf16.mxu1 %v1876_v35 }
0x11a3   :  { %1686 = vmatpush3.bf16.msra.mxu1 %v1685_v30 }
0x11a4   :  { %1687 = vmatprep.subr.bf16.mxu1 %v1876_v35 }
0x11a7   :  { %1689 = vmatpush3.bf16.msra.mxu1 %v1688_v32 }
0x11a8   :  { %1690 = vmatprep.subr.bf16.mxu1 %v1876_v35 }
0x11ab   :  { %1692 = vmatpush3.bf16.msra.mxu1 %v1691_v34 }
0x11ac   :  { %1693 = vmatprep.subr.bf16.mxu1 %v1876_v35 }
0x11af   :  { %1695 = vmatpush3.bf16.msra.mxu1 %v1694_v57 }
0x1265   :  { %v1166_v36 = vpop.f32.mrb[8].mxu1 }
0x1266   :  { %v1167_v45 = vadd.f32 %v1364_v20, %v1166_v36  ;;  %v1429_v50 = vpop.f32.mrb[9].mxu1 }
0x1268   :  { %v1170_v51 = vmax.f32 %v1167_v45, 0.0 }
0x126a   :  { %1463 = vmatmul.mubr.f32.vlgmr.msra.gmra.mrb[10].mxu0 %v1170_v51 }
0x133d   :  { %v1241_v38 = vpop.f32.mrb[10].mxu0 }
0x133e   :  { %v1242_v39 = vadd.f32 %v1366_v60, %v1241_v38  ;;  %v1464_v41 = vpop.f32.mrb[11].mxu0 }
0x1340   :  { %v1245_v42 = vmax.f32 %v1242_v39, 0.0 }
0x1342   :  { %1498 = vmatmul.mubr.f32.vlgmr.msra.gmra.mrb[10].mxu1 %v1245_v42 }
0x1415   :  { %v1316_v46 = vpop.f32.mrb[10].mxu1 }
0x1416   :  { %v1317_v35 = vadd.f32 %v1367_v43, %v1316_v46  ;;  %v1499_v47 = vpop.f32.mrb[11].mxu1 }
0x1418   :  { %1321 = vst.msk [vmem:[%s2121_s3] sm:$0xff] %vm1320_vm10, %v1317_v35 }
0x1419   :  { %1326 = vsyncpa [#allocation3], 1 }
0x141a   :  { %1327 = vsyncpa [#allocation5], 1 }

</bundles_post_ra>
